<compile_context>
chip_gen: v5e
topology: v5e:2x2
jax: 0.10.0
libtpu: 0.0.40
codegen_flags: <defaults>
</compile_context>

<pallas_src>
import math

import jax
import jax.numpy as jnp
from jax.experimental import pallas as pl
from jax.experimental.pallas import tpu as pltpu


def _round_up(v, m):
    return (v + m - 1) // m * m


def _support_kernel(x_ref, w_ref, s_ref):
    # support tile = x_tile @ W   (weight fully resident in VMEM)
    s_ref[...] = jnp.dot(
        x_ref[...], w_ref[...], preferred_element_type=jnp.float32
    ).astype(s_ref.dtype)


def _aggregate_kernel(adj_ref, s_ref, b_ref, o_ref, acc_ref):
    # grid = (row tiles i, output-col tiles j, reduction k over N)
    k = pl.program_id(2)

    @pl.when(k == 0)
    def _init():
        acc_ref[...] = jnp.zeros_like(acc_ref)

    acc_ref[...] += jnp.dot(
        adj_ref[...], s_ref[...], preferred_element_type=jnp.float32
    )

    @pl.when(k == pl.num_programs(2) - 1)
    def _finalize():
        # Bias broadcast happens exactly once per output tile (not per k step).
        o_ref[...] = (acc_ref[...] + b_ref[...]).astype(o_ref.dtype)


def graph_convolution_layer(
    x,
    adj,
    weight,
    bias=None,
    *,
    tm=256,           # output-row tile (multiple of 8; here a multiple of 128)
    tk=512,           # reduction tile over N (multiple of 128)
    tn=256,           # output-col tile (multiple of 128)
    compute_dtype=jnp.float32,  # use jnp.bfloat16 on v6e/v7x for more MXU/HBM headroom
):
    """Pallas GCN layer: output = adj @ (x @ weight) + bias."""
    n, in_f = x.shape
    out_f = weight.shape[1]
    assert adj.shape == (n, n)
    assert weight.shape == (in_f, out_f)

    # ---- pick tile sizes / padded shapes (lane-dense, tile-divisible) ----
    out_f_al = _round_up(out_f, 128)
    tn = min(tn, out_f_al)
    out_f_pad = _round_up(out_f, tn)

    n_al = _round_up(n, 128)
    tm = min(tm, n_al)
    tk = min(tk, n_al)
    lcm_mk = tm * tk // math.gcd(tm, tk)
    n_pad = _round_up(n, lcm_mk)

    in_f_pad = _round_up(in_f, 8)

    # ---- zero-pad + cast in the XLA wrapper (zeros are inert for both matmuls) ----
    x_p = jnp.pad(x, ((0, n_pad - n), (0, in_f_pad - in_f))).astype(compute_dtype)
    adj_p = jnp.pad(adj, ((0, n_pad - n), (0, n_pad - n))).astype(compute_dtype)
    w_p = jnp.pad(
        weight, ((0, in_f_pad - in_f), (0, out_f_pad - out_f))
    ).astype(compute_dtype)
    if bias is None:
        b_p = jnp.zeros((1, out_f_pad), jnp.float32)
    else:
        b_p = jnp.pad(bias, (0, out_f_pad - out_f)).reshape(1, out_f_pad).astype(jnp.float32)

    # ---- stage 1: support = x @ W  (tiny matmul, tiled over rows) ----
    support = pl.pallas_call(
        _support_kernel,
        out_shape=jax.ShapeDtypeStruct((n_pad, out_f_pad), compute_dtype),
        grid_spec=pltpu.PrefetchScalarGridSpec(
            num_scalar_prefetch=0,
            grid=(n_pad // tm,),
            in_specs=[
                pl.BlockSpec((tm, in_f_pad), lambda i: (i, 0)),
                pl.BlockSpec((in_f_pad, out_f_pad), lambda i: (0, 0)),
            ],
            out_specs=pl.BlockSpec((tm, out_f_pad), lambda i: (i, 0)),
        ),
        compiler_params=pltpu.CompilerParams(
            dimension_semantics=("parallel",),
        ),
    )(x_p, w_p)

    # ---- stage 2: output = adj @ support + bias  (tiled K-reduction matmul) ----
    out_p = pl.pallas_call(
        _aggregate_kernel,
        out_shape=jax.ShapeDtypeStruct((n_pad, out_f_pad), jnp.float32),
        grid_spec=pltpu.PrefetchScalarGridSpec(
            num_scalar_prefetch=0,
            grid=(n_pad // tm, out_f_pad // tn, n_pad // tk),
            in_specs=[
                pl.BlockSpec((tm, tk), lambda i, j, k: (i, k)),   # adj tile
                pl.BlockSpec((tk, tn), lambda i, j, k: (k, j)),   # support tile
                pl.BlockSpec((1, tn), lambda i, j, k: (0, j)),    # bias tile
            ],
            out_specs=pl.BlockSpec((tm, tn), lambda i, j, k: (i, j)),
            scratch_shapes=[pltpu.VMEM((tm, tn), jnp.float32)],
        ),
        compiler_params=pltpu.CompilerParams(
            dimension_semantics=("parallel", "parallel", "arbitrary"),
        ),
    )(adj_p, support, b_p)

    return out_p[:n, :out_f]


if __name__ == "__main__":
    key = jax.random.PRNGKey(0)
    k_x, k_adj, k_w, k_b = jax.random.split(key, 4)

    # Small shapes consistent with the module's forward: N nodes, F_in -> F_out.
    N = 8
    in_features = 16
    out_features = 32

    # Deterministic parameter init mirroring reset_parameters():
    # uniform(-stdv, stdv) with stdv = 1 / sqrt(out_features)
    stdv = 1.0 / math.sqrt(out_features)
    weight = jax.random.uniform(
        k_w, (in_features, out_features), jnp.float32, minval=-stdv, maxval=stdv
    )
    bias = jax.random.uniform(
        k_b, (out_features,), jnp.float32, minval=-stdv, maxval=stdv
    )

    x = jax.random.normal(k_x, (N, in_features), jnp.float32)
    adj_raw = jax.random.uniform(k_adj, (N, N), jnp.float32)
    adj = adj_raw / jnp.sum(adj_raw, axis=1, keepdims=True)  # row-normalized

    out = jax.block_until_ready(graph_convolution_layer(x, adj, weight, bias))
    ref = adj @ (x @ weight) + bias
    assert out.shape == (N, out_features)
    assert jnp.allclose(out, ref, atol=1e-5, rtol=1e-5)

    # Second check: shapes that exercise padding and the multi-tile reduction grid.
    N2, f_in2, f_out2 = 300, 24, 200
    k_x2, k_adj2, k_w2, k_b2 = jax.random.split(jax.random.PRNGKey(1), 4)
    stdv2 = 1.0 / math.sqrt(f_out2)
    w2 = jax.random.uniform(k_w2, (f_in2, f_out2), jnp.float32, minval=-stdv2, maxval=stdv2)
    b2 = jax.random.uniform(k_b2, (f_out2,), jnp.float32, minval=-stdv2, maxval=stdv2)
    x2 = jax.random.normal(k_x2, (N2, f_in2), jnp.float32)
    adj2 = jax.random.uniform(k_adj2, (N2, N2), jnp.float32)
    adj2 = adj2 / jnp.sum(adj2, axis=1, keepdims=True)

    out2 = jax.block_until_ready(graph_convolution_layer(x2, adj2, w2, b2))
    ref2 = adj2 @ (x2 @ w2) + b2
    assert out2.shape == (N2, f_out2)
    assert jnp.allclose(out2, ref2, atol=2e-2, rtol=2e-2)

    print("KERNEL_OK")
</pallas_src>

<mosaic_0001>
module attributes {stable_mosaic.version = 11 : i64} {
  func.func @_support_kernel(%arg0: i32, %arg1: memref<128x16xf32, #tpu.memory_space<vmem>>, %arg2: memref<16x128xf32, #tpu.memory_space<vmem>>, %arg3: memref<128x128xf32, #tpu.memory_space<vmem>>) attributes {dimension_semantics = [#tpu.dimension_semantics<parallel>], iteration_bounds = array<i64: 1>, scalar_prefetch = 0 : i64, scratch_operands = 0 : i64, tpu.core_type = #tpu.core_type<tc>, window_params = [{transform_indices = @transform_0, window_bounds = array<i64: 128, 16>}, {pipeline_mode = #tpu.pipeline_mode<synchronous>, transform_indices = @transform_1, window_bounds = array<i64: 16, 128>}, {transform_indices = @transform_2, window_bounds = array<i64: 128, 128>}]} {
    %c0 = arith.constant 0 : index
    %c0_0 = arith.constant 0 : index
    %0 = vector.load %arg1[%c0, %c0_0] : memref<128x16xf32, #tpu.memory_space<vmem>>, vector<128x16xf32>
    %c0_1 = arith.constant 0 : index
    %c0_2 = arith.constant 0 : index
    %1 = vector.load %arg2[%c0_1, %c0_2] : memref<16x128xf32, #tpu.memory_space<vmem>>, vector<16x128xf32>
    %cst = arith.constant dense<0.000000e+00> : vector<128x128xf32>
    %2 = tpu.matmul %0, %1, %cst {dimension_numbers = #tpu.dot_dimension_numbers<[1], [0], [0], [1], [0, 0, 1, 1], [], []>} : vector<128x16xf32>, vector<16x128xf32>, vector<128x128xf32> -> vector<128x128xf32>
    %c0_3 = arith.constant 0 : index
    %c0_4 = arith.constant 0 : index
    %3 = vector.load %arg3[%c0_3, %c0_4] : memref<128x128xf32, #tpu.memory_space<vmem>>, vector<128x128xf32>
    tpu.vector_store %arg3[%c0_3, %c0_4], %2 {strides = array<i32>} : memref<128x128xf32, #tpu.memory_space<vmem>>, vector<128x128xf32>,
    return
  }
  func.func @transform_0(%arg0: i32) -> (i32, i32) {
    %c0_i32 = arith.constant 0 : i32
    %c0_i32_0 = arith.constant 0 : i32
    return %arg0, %c0_i32 : i32, i32
  }
  func.func @transform_1(%arg0: i32) -> (i32, i32) {
    %c0_i32 = arith.constant 0 : i32
    %c0_i32_0 = arith.constant 0 : i32
    %c0_i32_1 = arith.constant 0 : i32
    return %c0_i32, %c0_i32_0 : i32, i32
  }
  func.func @transform_2(%arg0: i32) -> (i32, i32) {
    %c0_i32 = arith.constant 0 : i32
    %c0_i32_0 = arith.constant 0 : i32
    return %arg0, %c0_i32 : i32, i32
  }
}

</mosaic_0001>

<bundles_post_ra>
// kernel: tpu_custom_call.1
= control target key start
LH: loop header
LB: loop body
LE: loop exit
PB: predicated region body
PF: predicated region fallthrough
CT: control target
= control target key end

     0   :  { %vm30_vm0 = vcmask 130048   ;;  %s320_s0 = inlined_call_operand.vmem [shape: f32[128,16], index: 0, kind: input, shape index: {}]   ;;  %s321_s1 = inlined_call_operand.vmem [shape: f32[16,128], index: 1, kind: input, shape index: {}]   ;;  %s322_s2 = inlined_call_operand.hbm [shape: f32[128,128], index: 2, kind: output, shape index: {}]  }
   0x1   :  { %v29_v0 = vld [vmem:[%s321_s1 + $0x8] sm:$0xff]  ;;  %v28_v1 = vld [vmem:[%s321_s1] sm:$0xff] }
   0x2   :  { %195 = vmatpush.msra.mxu2 %v29_v0  ;;  %196 = vmatpush.msra.mxu3 %v29_v0  ;;  %v20_v2 = vld [vmem:[%s320_s0 + $0x40] sm:$0xff] }
   0x3   :  { %v24_v3 = vld [vmem:[%s320_s0 + $0x60] sm:$0xff]  ;;  %93 = vmatpush.msra.mxu0 %v29_v0  ;;  %194 = vmatpush.msra.mxu1 %v29_v0 }
   0x4   :  { %198 = vmatpush.msra.mxu2 %v28_v1  ;;  %199 = vmatpush.msra.mxu3 %v28_v1  ;;  %v12_v4 = vld [vmem:[%s320_s0] sm:$0xff] }
   0x5   :  { %v16_v5 = vld [vmem:[%s320_s0 + $0x20] sm:$0xff]  ;;  %186 = vmatmul.msk.f32.vlgmr.msra.gmra.mxu2 %vm30_vm0, %v20_v2  ;;  %190 = vmatmul.msk.f32.vlgmr.msra.gmra.mxu3 %vm30_vm0, %v24_v3 }
   0x6   :  { %94 = vmatpush.msra.mxu0 %v28_v1  ;;  %197 = vmatpush.msra.mxu1 %v28_v1 }
   0x7   :  { %178 = vmatmul.msk.f32.vlgmr.msra.gmra.mxu0 %vm30_vm0, %v12_v4  ;;  %182 = vmatmul.msk.f32.vlgmr.msra.gmra.mxu1 %vm30_vm0, %v16_v5 }
   0x8   :  { %7 = vsyncpa [#allocation3], 0  ;;  %v21_v6 = vld [vmem:[%s320_s0 + $0x48] sm:$0xff]  ;;  %v22_v10 = vld [vmem:[%s320_s0 + $0x50] sm:$0xff]  ;;  %s166_s1 = sshll.u32 %s322_s2, 4  ;;  %s230_s19 = smov 128   ;;  %s167_s1 = int_to_ptr.hbm [resolvable:$true] %s166_s1 }
   0x9   :  { %v25_v7 = vld [vmem:[%s320_s0 + $0x68] sm:$0xff]  ;;  %v26_v11 = vld [vmem:[%s320_s0 + $0x70] sm:$0xff]  ;;  %v23_v14 = vld [vmem:[%s320_s0 + $0x58] sm:$0xff]  ;;  %s231_s20 = smov 8  }
   0xa   :  { %v13_v8 = vld [vmem:[%s320_s0 + $0x8] sm:$0xff]  ;;  %v14_v12 = vld [vmem:[%s320_s0 + $0x10] sm:$0xff]  ;;  %v27_v15 = vld [vmem:[%s320_s0 + $0x78] sm:$0xff] }
   0xb   :  { %v17_v9 = vld [vmem:[%s320_s0 + $0x28] sm:$0xff]  ;;  %v18_v13 = vld [vmem:[%s320_s0 + $0x30] sm:$0xff]  ;;  %v15_v16 = vld [vmem:[%s320_s0 + $0x18] sm:$0xff] }
   0xc   :  { %v19_v17 = vld [vmem:[%s320_s0 + $0x38] sm:$0xff]  ;;  %s229_s0 = smov [#allocation2]  }
   0xd   :  { %187 = vmatmul.msk.f32.gmra.mxu2 %vm30_vm0, %v21_v6  ;;  %191 = vmatmul.msk.f32.gmra.mxu3 %vm30_vm0, %v25_v7  ;;  %s164_s16 = sshll.u32 %s229_s0, 4  ;;  %s165_s16 = int_to_ptr.vmem [resolvable:$true] %s164_s16 }
   0xf   :  { %179 = vmatmul.msk.f32.gmra.mxu0 %vm30_vm0, %v13_v8  ;;  %183 = vmatmul.msk.f32.gmra.mxu1 %vm30_vm0, %v17_v9 }
  0x15   :  { %188 = vmatmul.msk.f32.gmra.mxu2 %vm30_vm0, %v22_v10  ;;  %192 = vmatmul.msk.f32.gmra.mxu3 %vm30_vm0, %v26_v11 }
  0x17   :  { %180 = vmatmul.msk.f32.gmra.mxu0 %vm30_vm0, %v14_v12  ;;  %184 = vmatmul.msk.f32.gmra.mxu1 %vm30_vm0, %v18_v13 }
  0x1d   :  { %189 = vmatmul.msk.f32.gmra.mxu2 %vm30_vm0, %v23_v14  ;;  %193 = vmatmul.msk.f32.gmra.mxu3 %vm30_vm0, %v27_v15 }
  0x1f   :  { %181 = vmatmul.msk.f32.gmra.mxu0 %vm30_vm0, %v15_v16  ;;  %185 = vmatmul.msk.f32.gmra.mxu1 %vm30_vm0, %v19_v17 }
  0x84   :  { %v96_v18 = vpop.f32.mrf.mxu0  ;;  %v108_v19 = vpop.f32.mrf.mxu1 }
  0x85   :  { %144 = vst [vmem:[#allocation2] sm:$0xff] %v96_v18 }
  0x86   :  { %148 = vst [vmem:[#allocation2 + $0x20] sm:$0xff] %v108_v19 }
  0x88   :  { %v120_v20 = vpop.f32.mrf.mxu2  ;;  %v132_v21 = vpop.f32.mrf.mxu3 }
  0x89   :  { %152 = vst [vmem:[#allocation2 + $0x40] sm:$0xff] %v120_v20 }
  0x8a   :  { %156 = vst [vmem:[#allocation2 + $0x60] sm:$0xff] %v132_v21 }
  0x8c   :  { %v99_v22 = vpop.f32.mrf.mxu0  ;;  %v111_v23 = vpop.f32.mrf.mxu1 }
  0x8d   :  { %145 = vst [vmem:[#allocation2 + $0x8] sm:$0xff] %v99_v22 }
  0x8e   :  { %149 = vst [vmem:[#allocation2 + $0x28] sm:$0xff] %v111_v23 }
  0x90   :  { %v123_v24 = vpop.f32.mrf.mxu2  ;;  %v135_v25 = vpop.f32.mrf.mxu3 }
  0x91   :  { %153 = vst [vmem:[#allocation2 + $0x48] sm:$0xff] %v123_v24 }
  0x92   :  { %157 = vst [vmem:[#allocation2 + $0x68] sm:$0xff] %v135_v25 }
  0x94   :  { %v102_v26 = vpop.f32.mrf.mxu0  ;;  %v114_v27 = vpop.f32.mrf.mxu1 }
  0x95   :  { %146 = vst [vmem:[#allocation2 + $0x10] sm:$0xff] %v102_v26 }
  0x96   :  { %150 = vst [vmem:[#allocation2 + $0x30] sm:$0xff] %v114_v27 }
  0x98   :  { %v126_v28 = vpop.f32.mrf.mxu2  ;;  %v138_v29 = vpop.f32.mrf.mxu3 }
  0x99   :  { %154 = vst [vmem:[#allocation2 + $0x50] sm:$0xff] %v126_v28 }
  0x9a   :  { %158 = vst [vmem:[#allocation2 + $0x70] sm:$0xff] %v138_v29 }
  0x9c   :  { %v105_v30 = vpop.f32.mrf.mxu0  ;;  %v117_v31 = vpop.f32.mrf.mxu1 }
  0x9d   :  { %147 = vst [vmem:[#allocation2 + $0x18] sm:$0xff] %v105_v30 }
  0x9e   :  { %151 = vst [vmem:[#allocation2 + $0x38] sm:$0xff] %v117_v31 }
  0xa0   :  { %v129_v32 = vpop.f32.mrf.mxu2  ;;  %v141_v33 = vpop.f32.mrf.mxu3 }
  0xa1   :  { %155 = vst [vmem:[#allocation2 + $0x58] sm:$0xff] %v129_v32 }
  0xa2   :  { %159 = vst [vmem:[#allocation2 + $0x78] sm:$0xff] %v141_v33 }
  0xa3   :  { %172 = dma.vmem_to_hbm [thread:$0]  %s165_s16, 2048, %s167_s1, [#allocation3], %s230_s19, %s230_s19, %s231_s20  }
  0xa4   :  { %227 = dma.done.wait [#allocation3], 2048  }
  0xa5   :  { %228 = vsyncadd [#allocation3], 4294965248 }
  0xa6   :  { %177 = vsyncpa [#allocation3], 1 }

</bundles_post_ra>
